<compile_context>
chip_gen: v5e
topology: v5e:2x2
jax: 0.10.0
libtpu: 0.0.40
codegen_flags: <defaults>
</compile_context>

<pallas_src>
import functools

import jax
import jax.numpy as jnp
from jax.experimental import pallas as pl
from jax.experimental.pallas import tpu as pltpu


def _hmax_kernel(x_ref, o_ref, *, height, width, part, pack):
    """x_ref: (TB, H*W) -> o_ref: (TB, part) or packed (TB//pack, pack*part)."""
    x = x_ref[...]                                    # (TB, H*W)
    tb = x.shape[0]

    if height % part == 0:
        group = (height // part) * width              # contiguous lanes per part
        if group % 128 == 0 and group > 128:
            # Wide feature maps: fold the k 128-lane chunks of each group with
            # pure-VPU jnp.maximum on vreg-aligned contiguous slices (no lane
            # movement); only one intrinsic 128->1 cross-lane (XLU) reduce per
            # part remains.
            k = group // 128
            cols = []
            for p in range(part):
                seg = x[:, p * group:(p + 1) * group]
                acc = seg[:, 0:128]
                for j in range(1, k):
                    acc = jnp.maximum(acc, seg[:, j * 128:(j + 1) * 128])
                cols.append(jnp.max(acc, axis=-1, keepdims=True))
            out = jnp.concatenate(cols, axis=-1)      # (TB, part)
        else:
            # Small groups (< 128 lanes): one grouped reduce.
            # TODO(synk): a pltpu.roll+jnp.maximum tree could trim XLU ops
            # further on v7x, but the strided group-head lane gather it needs
            # has no clean non-XLU lowering, so keep the plain reduce here.
            out = jnp.max(x.reshape(tb, part, group), axis=-1)   # (TB, part)
    else:
        # Ragged PyTorch adaptive boundaries (groups may overlap):
        #   start_i = floor(i*H/part), end_i = ceil((i+1)*H/part)
        # Reduce W once, then take per-part maxes over the tiny (TB, H) array
        # so overlapping groups never re-reduce full W-wide lane segments.
        row_max = jnp.max(x.reshape(tb, height, width), axis=-1)   # (TB, H)
        cols = []
        for i in range(part):
            start = (i * height) // part
            end = -((-(i + 1) * height) // part)
            cols.append(jnp.max(row_max[:, start:end], axis=-1, keepdims=True))
        out = jnp.concatenate(cols, axis=-1)                       # (TB, part)

    if pack is not None:
        out = out.reshape(tb // pack, pack * part)    # lane-dense 128-wide store
    o_ref[...] = out.astype(o_ref.dtype)              # single full-tile store


def horizontal_max_pool2d(x: jax.Array, part: int = 8) -> jax.Array:
    """Equivalent of HorizontalMaxPool2d(part).forward(x) for NCHW input."""
    n, c, h, w = x.shape
    b = n * c
    hw = h * w
    x_flat = x.reshape(b, hw)                         # lane-dense input layout

    itemsize = jnp.dtype(x.dtype).itemsize
    sub_mult = 8 * max(1, 4 // itemsize)              # 8 f32 / 16 bf16 / 32 i8

    # Lane-dense packed output when shapes allow: pack = 128//part batch rows
    # per output row.  b % pack == 0 keeps valid/garbage rows from sharing a
    # packed row when the last grid block is partial (Pallas masks writeback).
    pack = None
    if part <= 128 and 128 % part == 0 and b % (128 // part) == 0:
        pack = 128 // part
    mult = sub_mult if pack is None else max(sub_mult, 8 * pack)

    # ~8 MiB input blocks amortize the ~0.35 us per-grid-step overhead and sit
    # near the HBM roofline; 2x double-buffered blocks stay well inside scoped
    # VMEM on v5e/v6e (128 MiB) and v7x (64 MiB per TensorCore).
    row_bytes = hw * itemsize
    target_bytes = 8 * 1024 * 1024
    tb = max(mult, (target_bytes // max(row_bytes, 1)) // mult * mult)
    if tb >= b:
        if b >= 2 * mult:
            # Keep >= 2 grid steps so both v7x TensorCores get work
            # (neutral on single-TC v5e/v6e).
            tb = ((pl.cdiv(b, 2) + mult - 1) // mult) * mult
        else:
            tb = b                                    # full-dim block is legal
    grid = (pl.cdiv(b, tb),)

    if pack is not None:
        out_shape = jax.ShapeDtypeStruct((b // pack, pack * part), x.dtype)
        out_spec = pl.BlockSpec((tb // pack, pack * part), lambda i: (i, 0))
        out_block_bytes = (tb // pack) * pack * part * itemsize
    else:
        out_shape = jax.ShapeDtypeStruct((b, part), x.dtype)
        out_spec = pl.BlockSpec((tb, part), lambda i: (i, 0))
        out_block_bytes = tb * max(part, 128) * itemsize   # lane-padded to 128

    in_block_bytes = tb * hw * itemsize
    # Explicit VMEM budget: double-buffered input + output blocks + slack.
    # (Default scoped limit is only 16 MiB on v5e.)  Capped under v7x's 64 MiB.
    vmem_limit = 2 * in_block_bytes + 2 * out_block_bytes + 4 * 1024 * 1024
    vmem_limit = int(min(max(vmem_limit, 32 * 1024 * 1024), 48 * 1024 * 1024))

    kernel = functools.partial(_hmax_kernel, height=h, width=w, part=part,
                               pack=pack)

    out = pl.pallas_call(
        kernel,
        out_shape=out_shape,
        grid=grid,
        in_specs=[pl.BlockSpec((tb, hw), lambda i: (i, 0))],
        out_specs=out_spec,
        compiler_params=pltpu.CompilerParams(
            dimension_semantics=("parallel",),
            vmem_limit_bytes=vmem_limit),
        cost_estimate=pl.CostEstimate(
            flops=b * hw,                             # max-compare ops
            transcendentals=0,
            bytes_accessed=b * hw * itemsize + b * part * itemsize),
    )(x_flat)

    out_flat = out.reshape(b, part)                   # row-major identical
    return out_flat.reshape(n, c, part, 1)


def _reference(x: jnp.ndarray, part: int = 8) -> jnp.ndarray:
    """Pure-JAX reference for AdaptiveMaxPool2d((part, 1))."""
    n, c, h, w = x.shape
    row_max = jnp.max(x, axis=-1)                     # (N, C, H)
    cols = []
    for i in range(part):
        start = (i * h) // part
        end = -((-(i + 1) * h) // part)
        cols.append(jnp.max(row_max[..., start:end], axis=-1, keepdims=True))
    return jnp.concatenate(cols, axis=-1)[..., None]  # (N, C, part, 1)


if __name__ == "__main__":
    key = jax.random.PRNGKey(0)

    # Primary small NCHW input consistent with the module's usage.
    x = jax.random.normal(key, (2, 4, 16, 16), dtype=jnp.float32)
    out = jax.block_until_ready(horizontal_max_pool2d(x, part=8))
    assert out.shape == (2, 4, 8, 1), out.shape
    assert out.dtype == x.dtype
    assert jnp.allclose(out, _reference(x, part=8)), "mismatch (divisible)"

    # Ragged adaptive boundaries (H % part != 0).
    x2 = jax.random.normal(jax.random.PRNGKey(1), (2, 3, 12, 16), jnp.float32)
    out2 = jax.block_until_ready(horizontal_max_pool2d(x2, part=8))
    assert out2.shape == (2, 3, 8, 1), out2.shape
    assert jnp.allclose(out2, _reference(x2, part=8)), "mismatch (ragged)"

    # Lane-dense packed output + >=2 grid steps (b = 512, multiple of 128).
    x3 = jax.random.normal(jax.random.PRNGKey(2), (2, 256, 16, 16), jnp.float32)
    out3 = jax.block_until_ready(horizontal_max_pool2d(x3, part=8))
    assert out3.shape == (2, 256, 8, 1), out3.shape
    assert jnp.allclose(out3, _reference(x3, part=8)), "mismatch (packed)"

    # Wide-row VPU-fold path (group = (H//part)*W = 256 > 128).
    x4 = jax.random.normal(jax.random.PRNGKey(3), (2, 4, 16, 128), jnp.float32)
    out4 = jax.block_until_ready(horizontal_max_pool2d(x4, part=8))
    assert out4.shape == (2, 4, 8, 1), out4.shape
    assert jnp.allclose(out4, _reference(x4, part=8)), "mismatch (vpu-fold)"

    print("KERNEL_OK")
</pallas_src>

<mosaic_0001>
module attributes {stable_mosaic.version = 11 : i64} {
  func.func @_hmax_kernel(%arg0: i32, %arg1: memref<8x256xf32, #tpu.memory_space<vmem>>, %arg2: memref<8x8xf32, #tpu.memory_space<vmem>>) attributes {dimension_semantics = [#tpu.dimension_semantics<parallel>], iteration_bounds = array<i64: 1>, scalar_prefetch = 0 : i64, scratch_operands = 0 : i64, tpu.core_type = #tpu.core_type<tc>, window_params = [{transform_indices = @transform_0, window_bounds = array<i64: 8, 256>}, {transform_indices = @transform_1, window_bounds = array<i64: 8, 8>}]} {
    %c0 = arith.constant 0 : index
    %c0_0 = arith.constant 0 : index
    %0 = vector.load %arg1[%c0, %c0_0] : memref<8x256xf32, #tpu.memory_space<vmem>>, vector<8x256xf32>
    %1 = vector.shape_cast %0 : vector<8x256xf32> to vector<8x8x32xf32>
    %cst = arith.constant dense<0xFF800000> : vector<8x8xf32>
    %2 = vector.multi_reduction <maximumf>, %1, %cst [2] : vector<8x8x32xf32> to vector<8x8xf32>
    %c0_1 = arith.constant 0 : index
    %c0_2 = arith.constant 0 : index
    %3 = vector.load %arg2[%c0_1, %c0_2] : memref<8x8xf32, #tpu.memory_space<vmem>>, vector<8x8xf32>
    tpu.vector_store %arg2[%c0_1, %c0_2], %2 {strides = array<i32>} : memref<8x8xf32, #tpu.memory_space<vmem>>, vector<8x8xf32>,
    return
  }
  func.func @transform_0(%arg0: i32) -> (i32, i32) {
    %c0_i32 = arith.constant 0 : i32
    %c0_i32_0 = arith.constant 0 : i32
    return %arg0, %c0_i32 : i32, i32
  }
  func.func @transform_1(%arg0: i32) -> (i32, i32) {
    %c0_i32 = arith.constant 0 : i32
    %c0_i32_0 = arith.constant 0 : i32
    return %arg0, %c0_i32 : i32, i32
  }
}

</mosaic_0001>

<bundles_post_ra>
// kernel: tpu_custom_call.1
= control target key start
LH: loop header
LB: loop body
LE: loop exit
PB: predicated region body
PF: predicated region fallthrough
CT: control target
= control target key end

     0   :  { %6 = vsyncpa [#allocation3], 0  ;;  %s349_s0 = inlined_call_operand.hbm [shape: f32[8,256], index: 0, kind: input, shape index: {}]   ;;  %s350_s1 = inlined_call_operand.hbm [shape: f32[8,8], index: 1, kind: output, shape index: {}]  }
   0x1   :  { %7 = vsyncpa [#allocation4], 0  ;;  %s13_s8 = sshll.u32 %s349_s0, 4  ;;  %s294_s9 = smov [#allocation2]   ;;  %s14_s8 = int_to_ptr.hbm [resolvable:$true] %s13_s8 }
   0x2   :  { %s15_s10 = sshll.u32 %s294_s9, 4  ;;  %s16_s10 = int_to_ptr.vmem [resolvable:$true] %s15_s10 }
   0x3   :  { %18 = dma.hbm_to_vmem [thread:$0]  %s14_s8, 256, %s16_s10, [#allocation3]  }
   0x4   :  { %290 = dma.done.wait [#allocation3], 256  }
   0x5   :  { %291 = vsyncadd [#allocation3], 4294967040  ;;  %v24_v0 = vld [vmem:[#allocation2 + $0x8] sm:$0xff]  ;;  %v23_v1 = vld [vmem:[#allocation2] sm:$0xff]  ;;  %s295_s11 = smov 64   ;;  %s296_s12 = smov 32  }
   0x6   :  { %39 = vrot.lane.b32.xlu1 %v24_v0, %s295_s11  ;;  %32 = vrot.lane.b32.xlu0 %v23_v1, %s296_s12  ;;  %s297_s13 = smov 96   ;;  %v298_v6 = vmov 1983009808   ;;  %vm46_vm0 = vcmask 1047556   ;;  %v48_v14 = vrot.slane %v23_v1, 4  ;;  %v72_v15 = vrot.slane %v24_v0, 4 }
   0x7   :  { %29 = vrot.lane.b32.xlu2 %v23_v1, %s295_s11  ;;  %v51_v7 = vunpack.c.l.s4 %v298_v6  ;;  %v299_v21 = vmov 1934713408   ;;  %vm158_vm1 = vcmask 261120   ;;  %vm201_vm2 = vcmask 1041409   ;;  %s300_s0 = smov [#allocation5]   ;;  %s225_s17 = sshll.u32 %s350_s1, 4  ;;  %s226_s17 = int_to_ptr.hbm [resolvable:$true] %s225_s17 }
   0x8   :  { %v99_v22 = vunpack.c.l.s4 %v299_v21  ;;  %vm203_vm3 = vcmask 1042434   ;;  %vm205_vm4 = vcmask 1043459   ;;  %vm207_vm5 = vcmask 1044484   ;;  %s223_s14 = sshll.u32 %s300_s0, 4  ;;  %s224_s14 = int_to_ptr.vmem [resolvable:$true] %s223_s14 }
   0x9   :  { %v52_v12 = vunpack.c.0.s8 %v51_v7  ;;  %vm209_vm6 = vcmask 1045509   ;;  %vm211_vm7 = vcmask 1046534   ;;  %vm213_vm8 = vcmask 1047559  }
   0xa   :  { %v100_v41 = vunpack.c.0.s8 %v99_v22  ;;  %v191_v22 = vlaneseq  ;;  %vm216_vm9 = vcmask 64512  }
   0xe   :  { %26 = vrot.lane.b32.xlu1 %v23_v1, %s297_s13  ;;  %42 = vrot.lane.b32.xlu0 %v24_v0, %s296_s12 }
   0xf   :  { %36 = vrot.lane.b32.xlu2 %v24_v0, %s297_s13 }
  0x61   :  { %v30_v2 = vpop.permute.xlu2 %29 }
  0x62   :  { %v45_v3 = vrot.slane %v30_v2, 4  ;;  %v49_v27 = vsel %vm46_vm0, %v30_v2, %v48_v14 }
  0x63   :  { %v57_v39 = vperm.slane %v49_v27, %v52_v12 }
  0x64   :  { %v47_v10 = vsel %vm46_vm0, %v45_v3, %v23_v1 }
  0x65   :  { %v53_v16 = vperm.slane %v47_v10, %v52_v12  ;;  %v108_v2 = vrot.slane %v57_v39, 4 }
  0x67   :  { %v96_v31 = vrot.slane %v53_v16, 4 }
  0x69   :  { %v37_v9 = vpop.permute.xlu2 %36 }
  0x6a   :  { %v84_v13 = vrot.slane %v37_v9, 4 }
  0x78   :  { %v40_v4 = vpop.permute.xlu1 %39  ;;  %v33_v5 = vpop.permute.xlu0 %32 }
  0x79   :  { %v70_v8 = vrot.slane %v40_v4, 4  ;;  %v58_v18 = vrot.slane %v33_v5, 4  ;;  %v73_v28 = vsel %vm46_vm0, %v40_v4, %v72_v15 }
  0x7a   :  { %v81_v40 = vperm.slane %v73_v28, %v52_v12 }
  0x7b   :  { %v71_v11 = vsel %vm46_vm0, %v70_v8, %v24_v0 }
  0x7c   :  { %v77_v17 = vperm.slane %v71_v11, %v52_v12  ;;  %v132_v60 = vrot.slane %v81_v40, 4 }
  0x7e   :  { %v120_v32 = vrot.slane %v77_v17, 4 }
  0x80   :  { %v27_v19 = vpop.permute.xlu1 %26  ;;  %v43_v20 = vpop.permute.xlu0 %42 }
  0x81   :  { %v59_v23 = vsel %vm46_vm0, %v58_v18, %v27_v19  ;;  %v60_v24 = vrot.slane %v27_v19, 4  ;;  %v82_v25 = vrot.slane %v43_v20, 4  ;;  %v85_v26 = vsel %vm46_vm0, %v43_v20, %v84_v13 }
  0x82   :  { %v65_v29 = vperm.slane %v59_v23, %v52_v12  ;;  %v93_v30 = vperm.slane %v85_v26, %v52_v12 }
  0x83   :  { %v61_v33 = vsel %vm46_vm0, %v33_v5, %v60_v24  ;;  %v83_v34 = vsel %vm46_vm0, %v82_v25, %v37_v9  ;;  %v192_v24 = vand.u32 127, %v191_v22 }
  0x84   :  { %v69_v35 = vperm.slane %v61_v33, %v52_v12  ;;  %v94_v36 = vrot.slane %v65_v29, 4  ;;  %v89_v37 = vperm.slane %v83_v34, %v52_v12  ;;  %v130_v38 = vrot.slane %v93_v30, 4 }
  0x85   :  { %v97_v44 = vsel %vm46_vm0, %v65_v29, %v96_v31  ;;  %v133_v3 = vsel %vm46_vm0, %v93_v30, %v132_v60 }
  0x86   :  { %v106_v42 = vrot.slane %v69_v35, 4  ;;  %v118_v43 = vrot.slane %v89_v37, 4  ;;  %v121_v45 = vsel %vm46_vm0, %v89_v37, %v120_v32  ;;  %v95_v47 = vsel %vm46_vm0, %v94_v36, %v53_v16 }
  0x87   :  { %v129_v46 = vperm.slane %v121_v45, %v100_v41  ;;  %v101_v48 = vperm.slane %v95_v47, %v100_v41  ;;  %v131_v51 = vsel %vm46_vm0, %v130_v38, %v81_v40  ;;  %v105_v52 = vperm.slane %v97_v44, %v100_v41 }
  0x88   :  { %v119_v49 = vsel %vm46_vm0, %v118_v43, %v77_v17  ;;  %v107_v50 = vsel %vm46_vm0, %v106_v42, %v57_v39  ;;  %v137_v59 = vperm.slane %v131_v51, %v100_v41  ;;  %v109_v7 = vsel %vm46_vm0, %v69_v35, %v108_v2 }
  0x89   :  { %v146_v53 = vrot.slane %v129_v46, 4  ;;  %v125_v54 = vperm.slane %v119_v49, %v100_v41  ;;  %v144_v55 = vrot.slane %v101_v48, 4  ;;  %v113_v56 = vperm.slane %v107_v50, %v100_v41 }
  0x8a   :  { %v148_v1 = vrot.slane %v105_v52, 4  ;;  %v150_v6 = vrot.slane %v137_v59, 4  ;;  %v141_v9 = vperm.slane %v133_v3, %v100_v41  ;;  %v117_v12 = vperm.slane %v109_v7, %v100_v41 }
  0x8b   :  { %v147_v57 = vsel %vm46_vm0, %v146_v53, %v105_v52  ;;  %v142_v58 = vrot.slane %v125_v54, 4  ;;  %v145_v62 = vsel %vm46_vm0, %v125_v54, %v144_v55  ;;  %v152_v5 = vrot.slane %v113_v56, 4 }
  0x8c   :  { %v165_v61 = vsel %vm158_vm1, %v147_v57, -inf  ;;  %v162_v63 = vsel %vm158_vm1, %v145_v62, -inf  ;;  %v149_v8 = vsel %vm46_vm0, %v129_v46, %v148_v1  ;;  %v151_v11 = vsel %vm46_vm0, %v150_v6, %v113_v56 }
  0x8d   :  { %166 = vmax.xlane.f32.xlu2 %v165_v61  ;;  %v143_v0 = vsel %vm46_vm0, %v142_v58, %v101_v48  ;;  %163 = vmax.xlane.f32.xlu1 %v162_v63  ;;  %v153_v10 = vsel %vm46_vm0, %v137_v59, %v152_v5  ;;  %v168_v13 = vsel %vm158_vm1, %v149_v8, -inf  ;;  %v154_v15 = vrot.slane %v141_v9, 4 }
  0x8e   :  { %v159_v4 = vsel %vm158_vm1, %v143_v0, -inf  ;;  %v174_v14 = vsel %vm158_vm1, %v153_v10, -inf  ;;  %v171_v16 = vsel %vm158_vm1, %v151_v11, -inf  ;;  %v156_v17 = vrot.slane %v117_v12, 4 }
  0x8f   :  { %160 = vmax.xlane.f32.xlu0 %v159_v4  ;;  %v155_v18 = vsel %vm46_vm0, %v154_v15, %v117_v12 }
  0x90   :  { %v157_v19 = vsel %vm46_vm0, %v141_v9, %v156_v17  ;;  %v177_v20 = vsel %vm158_vm1, %v155_v18, -inf }
  0x91   :  { %v180_v21 = vsel %vm158_vm1, %v157_v19, -inf }
  0x95   :  { %169 = vmax.xlane.f32.xlu2 %v168_v13  ;;  %175 = vmax.xlane.f32.xlu1 %v174_v14 }
  0x97   :  { %172 = vmax.xlane.f32.xlu0 %v171_v16 }
  0x9d   :  { %178 = vmax.xlane.f32.xlu2 %v177_v20 }
  0x9f   :  { %181 = vmax.xlane.f32.xlu0 %v180_v21 }
 0x100   :  { %v167_v23 = vpop.xlane.xlu2 %166  ;;  %v164_v26 = vpop.xlane.xlu1 %163 }
 0x101   :  { %v194_v28 = vperm.slane %v164_v26, %v192_v24  ;;  %v195_v31 = vperm.slane %v167_v23, %v192_v24 }
 0x102   :  { %v161_v25 = vpop.xlane.xlu0 %160 }
 0x103   :  { %v193_v27 = vperm.slane %v161_v25, %v192_v24 }
 0x105   :  { %v202_v29 = vsel %vm201_vm2, %v194_v28, %v193_v27 }
 0x106   :  { %v204_v34 = vsel %vm203_vm3, %v195_v31, %v202_v29 }
 0x108   :  { %v170_v30 = vpop.xlane.xlu2 %169  ;;  %v176_v37 = vpop.xlane.xlu1 %175 }
 0x109   :  { %v196_v32 = vperm.slane %v170_v30, %v192_v24  ;;  %v198_v39 = vperm.slane %v176_v37, %v192_v24 }
 0x10a   :  { %v173_v33 = vpop.xlane.xlu0 %172 }
 0x10b   :  { %v197_v35 = vperm.slane %v173_v33, %v192_v24  ;;  %v206_v36 = vsel %vm205_vm4, %v196_v32, %v204_v34 }
 0x10d   :  { %v208_v38 = vsel %vm207_vm5, %v197_v35, %v206_v36 }
 0x10e   :  { %v210_v42 = vsel %vm209_vm6, %v198_v39, %v208_v38 }
 0x110   :  { %v179_v40 = vpop.xlane.xlu2 %178 }
 0x111   :  { %v199_v41 = vperm.slane %v179_v40, %v192_v24 }
 0x112   :  { %v182_v43 = vpop.xlane.xlu0 %181 }
 0x113   :  { %v212_v44 = vsel %vm211_vm7, %v199_v41, %v210_v42  ;;  %v200_v45 = vperm.slane %v182_v43, %v192_v24 }
 0x115   :  { %v214_v46 = vsel %vm213_vm8, %v200_v45, %v212_v44 }
 0x116   :  { %217 = vst.msk [vmem:[#allocation5] sm:$0xff] %vm216_vm9, %v214_v46 }
 0x117   :  { %228 = dma.vmem_to_hbm [thread:$0]  %s224_s14, 128, %s226_s17, [#allocation4]  }
 0x118   :  { %292 = dma.done.wait [#allocation4], 128  }
 0x119   :  { %293 = vsyncadd [#allocation4], 4294967168 }
 0x11a   :  { %233 = vsyncpa [#allocation3], 1 }
 0x11b   :  { %234 = vsyncpa [#allocation4], 1 }

</bundles_post_ra>
